<compile_context>
chip_gen: v6e
topology: v6e:2x2x1
jax: 0.10.0
libtpu: 0.0.40
codegen_flags: <defaults>
</compile_context>

<pallas_src>
import jax
import jax.numpy as jnp
from jax import lax
from jax.experimental import pallas as pl
from jax.experimental.pallas import tpu as pltpu


def _round_up(v, m):
    return ((v + m - 1) // m) * m


# ---------------------------------------------------------------------------
# Kernels: out tile is VMEM-resident across the K ("arbitrary") axis, so it is
# used directly as the f32 accumulator — init at k == 0, accumulate every step.
# ---------------------------------------------------------------------------
def _matmul_bias_kernel(x_ref, w_ref, b_ref, o_ref):
    @pl.when(pl.program_id(2) == 0)
    def _():
        # Fold the bias broadcast into the accumulator init (no extra VPU pass
        # on the last K step).
        o_ref[...] = jnp.broadcast_to(b_ref[...].astype(o_ref.dtype), o_ref.shape)

    o_ref[...] += jnp.dot(
        x_ref[...], w_ref[...],
        preferred_element_type=jnp.float32,
        precision=lax.Precision.HIGHEST)


def _matmul_kernel(x_ref, w_ref, o_ref):
    @pl.when(pl.program_id(2) == 0)
    def _():
        o_ref[...] = jnp.zeros_like(o_ref)

    o_ref[...] += jnp.dot(
        x_ref[...], w_ref[...],
        preferred_element_type=jnp.float32,
        precision=lax.Precision.HIGHEST)


# ---------------------------------------------------------------------------
# Tile selection: lane-dense output (tn multiple of 128), sublane-aligned tm,
# big K tiles; split N across 2 blocks when both parallel axes would collapse
# to 1 (v7x megacore: both TensorCores get work).
# ---------------------------------------------------------------------------
def _choose_tiles(B, K, N, tm, tn, tk):
    tm = min(tm, _round_up(B, 8))
    tn = min(tn, _round_up(N, 128))
    tk = min(tk, _round_up(K, 128))
    if (_round_up(B, tm) // tm == 1) and (_round_up(N, tn) // tn == 1) and tn >= 256:
        tn = _round_up(tn // 2, 128)
    return tm, tn, tk


def my_linear(x, weight, bias=None, *, tm=512, tn=512, tk=1024,
              cast_inputs_to_bf16=False):
    """Pallas equivalent of LinearFunction.forward.

    x:      (B, in_features)            float32
    weight: (out_features, in_features) float32   (native nn.Linear layout)
    bias:   (out_features,) or None
    returns (B, out_features) float32
    """
    B, K = x.shape
    N, Kw = weight.shape
    assert K == Kw, "in_features mismatch"

    tm, tn, tk = _choose_tiles(B, K, N, tm, tn, tk)
    Mp, Np, Kp = _round_up(B, tm), _round_up(N, tn), _round_up(K, tk)

    # One-time parameter re-layout: (N, K) -> (K, N) so the kernel consumes
    # standard (tk, tn) RHS blocks (no per-tile transpose inside the K loop).
    # TODO(synk): cache w_t_p / b_p at init in a persistent module.
    w_t = weight.T
    w_t_p = w_t if (Kp == K and Np == N) else jnp.pad(w_t, ((0, Kp - K), (0, Np - N)))
    x_p = x if (Mp == B and Kp == K) else jnp.pad(x, ((0, Mp - B), (0, Kp - K)))

    if cast_inputs_to_bf16:
        # Opt-in: bf16 MXU inputs (f32 accumulate kept). Changes f32 numerics.
        x_p = x_p.astype(jnp.bfloat16)
        w_t_p = w_t_p.astype(jnp.bfloat16)

    grid = (Mp // tm, Np // tn, Kp // tk)

    in_specs = [
        pl.BlockSpec((tm, tk), lambda i, j, k: (i, k)),   # x tile
        pl.BlockSpec((tk, tn), lambda i, j, k: (k, j)),   # weight tile, (K, N) layout
    ]
    operands = [x_p, w_t_p]

    if bias is not None:
        b_p = bias if Np == N else jnp.pad(bias, (0, Np - N))
        operands.append(b_p.reshape(1, Np).astype(jnp.float32))
        in_specs.append(pl.BlockSpec((1, tn), lambda i, j, k: (0, j)))
        kernel = _matmul_bias_kernel
        bias_bytes = 4 * Np * (Mp // tm)
    else:
        kernel = _matmul_kernel
        bias_bytes = 0

    in_el_bytes = 2 if cast_inputs_to_bf16 else 4
    streamed_bytes = (
        in_el_bytes * Mp * Kp * (Np // tn)      # x re-read once per N tile column
        + in_el_bytes * Kp * Np * (Mp // tm)    # weight re-read once per M tile row
        + 4 * Mp * Np                           # output written once
        + bias_bytes)

    out_p = pl.pallas_call(
        kernel,
        out_shape=jax.ShapeDtypeStruct((Mp, Np), jnp.float32),
        grid_spec=pltpu.PrefetchScalarGridSpec(
            num_scalar_prefetch=0,
            grid=grid,
            in_specs=in_specs,
            out_specs=pl.BlockSpec((tm, tn), lambda i, j, k: (i, j)),
        ),
        compiler_params=pltpu.CompilerParams(
            dimension_semantics=("parallel", "parallel", "arbitrary"),
            vmem_limit_bytes=48 * 1024 * 1024,
        ),
        cost_estimate=pl.CostEstimate(
            flops=2 * Mp * Np * Kp,
            transcendentals=0,
            bytes_accessed=streamed_bytes,
        ),
    )(*operands)

    # Strip padding (no-op when shapes were already tile-aligned).
    return out_p[:B, :N].astype(x.dtype)


if __name__ == "__main__":
    # Small shapes consistent with MyLinear(input_features=32, output_features=16)
    B, IN_F, OUT_F = 8, 32, 16

    key = jax.random.PRNGKey(0)
    kx, kw, kb = jax.random.split(key, 3)

    x = jax.random.normal(kx, (B, IN_F), dtype=jnp.float32)
    # Deterministic param init matching weight.data.uniform_(-0.1, 0.1)
    weight = jax.random.uniform(kw, (OUT_F, IN_F), dtype=jnp.float32,
                                minval=-0.1, maxval=0.1)
    bias = jax.random.uniform(kb, (OUT_F,), dtype=jnp.float32,
                              minval=-0.1, maxval=0.1)

    # Bias path.
    out = my_linear(x, weight, bias)
    jax.block_until_ready(out)
    ref = jnp.dot(x, weight.T, precision=lax.Precision.HIGHEST) + bias[None, :]
    assert out.shape == (B, OUT_F)
    assert jnp.allclose(out, ref, atol=1e-5, rtol=1e-5)

    # bias=None path (specialized kernel).
    out_nb = my_linear(x, weight, None)
    jax.block_until_ready(out_nb)
    ref_nb = jnp.dot(x, weight.T, precision=lax.Precision.HIGHEST)
    assert jnp.allclose(out_nb, ref_nb, atol=1e-5, rtol=1e-5)

    # Exercise the multi-step grid: K accumulation loop (Kp/tk = 2), megacore
    # N split (Np/tn = 2), and N padding (384 -> 512, sliced back).
    k2x, k2w, k2b = jax.random.split(jax.random.PRNGKey(1), 3)
    B2, IN2, OUT2 = 256, 2048, 384
    x2 = jax.random.normal(k2x, (B2, IN2), dtype=jnp.float32)
    w2 = jax.random.uniform(k2w, (OUT2, IN2), dtype=jnp.float32,
                            minval=-0.1, maxval=0.1)
    b2 = jax.random.uniform(k2b, (OUT2,), dtype=jnp.float32,
                            minval=-0.1, maxval=0.1)
    out2 = my_linear(x2, w2, b2)
    jax.block_until_ready(out2)
    ref2 = jnp.dot(x2, w2.T, precision=lax.Precision.HIGHEST) + b2[None, :]
    assert out2.shape == (B2, OUT2)
    assert jnp.allclose(out2, ref2, atol=1e-3, rtol=1e-3)

    print("KERNEL_OK")
</pallas_src>

<mosaic_0001>
module attributes {stable_mosaic.version = 11 : i64} {
  func.func @_matmul_bias_kernel(%arg0: i32, %arg1: i32, %arg2: i32, %arg3: memref<8x128xf32, #tpu.memory_space<vmem>>, %arg4: memref<128x128xf32, #tpu.memory_space<vmem>>, %arg5: memref<1x128xf32, #tpu.memory_space<vmem>>, %arg6: memref<8x128xf32, #tpu.memory_space<vmem>>) attributes {dimension_semantics = [#tpu.dimension_semantics<parallel>, #tpu.dimension_semantics<parallel>, #tpu.dimension_semantics<arbitrary>], iteration_bounds = array<i64: 1, 1, 1>, scalar_prefetch = 0 : i64, scratch_operands = 0 : i64, tpu.core_type = #tpu.core_type<tc>, window_params = [{transform_indices = @transform_0, window_bounds = array<i64: 8, 128>}, {transform_indices = @transform_1, window_bounds = array<i64: 128, 128>}, {transform_indices = @transform_2, window_bounds = array<i64: 1, 128>}, {transform_indices = @transform_3, window_bounds = array<i64: 8, 128>}]} {
    %c0_i32 = arith.constant 0 : i32
    %0 = arith.cmpi eq, %arg2, %c0_i32 : i32
    %1 = arith.extui %0 : i1 to i32
    %c0_i32_0 = arith.constant 0 : i32
    %2 = arith.cmpi ne, %1, %c0_i32_0 : i32
    scf.if %2 {
      %c0_8 = arith.constant 0 : index
      %c0_9 = arith.constant 0 : index
      %9 = vector.load %arg5[%c0_8, %c0_9] : memref<1x128xf32, #tpu.memory_space<vmem>>, vector<1x128xf32>
      %10 = vector.shape_cast %9 : vector<1x128xf32> to vector<1x128xf32>
      %11 = vector.broadcast %10 : vector<1x128xf32> to vector<8x128xf32>
      %c0_10 = arith.constant 0 : index
      %c0_11 = arith.constant 0 : index
      %12 = vector.load %arg6[%c0_10, %c0_11] : memref<8x128xf32, #tpu.memory_space<vmem>>, vector<8x128xf32>
      tpu.vector_store %arg6[%c0_10, %c0_11], %11 {strides = array<i32>} : memref<8x128xf32, #tpu.memory_space<vmem>>, vector<8x128xf32>,
    } else {
    }
    %c0 = arith.constant 0 : index
    %c0_1 = arith.constant 0 : index
    %3 = vector.load %arg6[%c0, %c0_1] : memref<8x128xf32, #tpu.memory_space<vmem>>, vector<8x128xf32>
    %c0_2 = arith.constant 0 : index
    %c0_3 = arith.constant 0 : index
    %4 = vector.load %arg3[%c0_2, %c0_3] : memref<8x128xf32, #tpu.memory_space<vmem>>, vector<8x128xf32>
    %c0_4 = arith.constant 0 : index
    %c0_5 = arith.constant 0 : index
    %5 = vector.load %arg4[%c0_4, %c0_5] : memref<128x128xf32, #tpu.memory_space<vmem>>, vector<128x128xf32>
    %cst = arith.constant dense<0.000000e+00> : vector<8x128xf32>
    %6 = tpu.matmul %4, %5, %cst {dimension_numbers = #tpu.dot_dimension_numbers<[1], [0], [0], [1], [0, 0, 1, 1], [], []>, precision = #tpu.contract_precision<fp32>} : vector<8x128xf32>, vector<128x128xf32>, vector<8x128xf32> -> vector<8x128xf32>
    %7 = arith.addf %3, %6 : vector<8x128xf32>
    %c0_6 = arith.constant 0 : index
    %c0_7 = arith.constant 0 : index
    %8 = vector.load %arg6[%c0_6, %c0_7] : memref<8x128xf32, #tpu.memory_space<vmem>>, vector<8x128xf32>
    tpu.vector_store %arg6[%c0_6, %c0_7], %7 {strides = array<i32>} : memref<8x128xf32, #tpu.memory_space<vmem>>, vector<8x128xf32>,
    return
  }
  func.func @transform_0(%arg0: i32, %arg1: i32, %arg2: i32) -> (i32, i32) {
    %c0_i32 = arith.constant 0 : i32
    return %arg0, %arg2 : i32, i32
  }
  func.func @transform_1(%arg0: i32, %arg1: i32, %arg2: i32) -> (i32, i32) {
    %c0_i32 = arith.constant 0 : i32
    return %arg2, %arg1 : i32, i32
  }
  func.func @transform_2(%arg0: i32, %arg1: i32, %arg2: i32) -> (i32, i32) {
    %c0_i32 = arith.constant 0 : i32
    %c0_i32_0 = arith.constant 0 : i32
    return %c0_i32, %arg1 : i32, i32
  }
  func.func @transform_3(%arg0: i32, %arg1: i32, %arg2: i32) -> (i32, i32) {
    %c0_i32 = arith.constant 0 : i32
    return %arg0, %arg1 : i32, i32
  }
}

</mosaic_0001>

<bundles_post_ra>
// kernel: tpu_custom_call.1
= control target key start
LH: loop header
LB: loop body
LE: loop exit
PB: predicated region body
PF: predicated region fallthrough
CT: control target
= control target key end

     0   :  { %8 = vsyncpa [#allocation3], 0  ;;  %s1518_s0 = inlined_call_operand.hbm [shape: f32[8,128], index: 0, kind: input, shape index: {}]   ;;  %s1519_s1 = inlined_call_operand.hbm [shape: f32[128,128], index: 1, kind: input, shape index: {}]   ;;  %s1520_s2 = inlined_call_operand.vmem [shape: f32[1,128], index: 2, kind: input, shape index: {}]   ;;  %s1521_s3 = inlined_call_operand.hbm [shape: f32[8,128], index: 3, kind: output, shape index: {}]  }
   0x1   :  { %9 = vsyncpa [#allocation6], 0 }
   0x2   :  { %10 = vsyncpa [#allocation4], 0  ;;  %s1116_s12 = smov [#allocation2]   ;;  %s1117_s14 = smov [#allocation5]  }
   0x3   :  { %s17_s13 = sshll.u32 %s1116_s12, 4  ;;  %s26_s15 = sshll.u32 %s1117_s14, 4  ;;  %s18_s13 = int_to_ptr.vmem [resolvable:$true] %s17_s13  ;;  %s27_s15 = int_to_ptr.vmem [resolvable:$true] %s26_s15 }
   0x4   :  { %s1058_s16 = scalar_lea.vmem %s18_s13, 128  ;;  %p1063_p1 = scmp.lt.s32.totalorder %s18_s13, %s18_s13 }
   0x5   :  { %p1059_p0 = scmp.ne.s32.totalorder %s18_s13, %s1058_s16  ;;  %p1064_p2 = scmp.lt.s32.totalorder %s1058_s16, %s1058_s16 }
   0x7   :  { %p1065_p3 = por %p1064_p2, %p1063_p1 }
   0x9   :  { %p1066_p4 = pnand %p1065_p3, %p1059_p0 }
   0xb   :  { %1069 = shalt.err (!%p1066_p4)
}
   0xc   :  { %20 = dma.hbm_to_vmem [thread:$0]  %s1518_s0, 128, %s18_s13, [#allocation3]  }
   0xd   :  { %s1078_s19 = scalar_lea.vmem %s27_s15, 2048  ;;  %p1083_p6 = scmp.lt.s32.totalorder %s27_s15, %s27_s15 }
   0xe   :  { %p1079_p5 = scmp.ne.s32.totalorder %s27_s15, %s1078_s19  ;;  %p1084_p7 = scmp.lt.s32.totalorder %s1078_s19, %s1078_s19 }
  0x10   :  { %p1085_p8 = por %p1084_p7, %p1083_p6 }
  0x12   :  { %p1086_p9 = pnand %p1085_p8, %p1079_p5 }
  0x14   :  { %1089 = shalt.err (!%p1086_p9)
}
  0x15   :  { %s1118_s20 = smov 128   ;;  %s1119_s21 = smov 8  }
  0x16   :  { %32 = dma.hbm_to_vmem [thread:$0]  %s1519_s1, 2048, %s27_s15, [#allocation6], %s1118_s20, %s1118_s20, %s1119_s21  }
  0x17   :  { %1110 = dma.done.wait [#allocation3], 128  }
  0x18   :  { %1111 = vsyncadd [#allocation3], 4294967168 }
  0x19   :  { %1112 = dma.done.wait [#allocation6], 2048  }
  0x1a   :  { %1113 = vsyncadd [#allocation6], 4294965248  ;;  %v1120_v0 = vmov 0.0   ;;  %vm1121_vm0 = vmmov 0   ;;  %v70_v1 = vld [vmem:[#allocation5 + $0x78] sm:$0xff]  ;;  %v69_v2 = vld [vmem:[#allocation5 + $0x70] sm:$0xff] }
  0x1b   :  { %833 = vmatprep.subr.mxu0 %v1120_v0  ;;  %868 = vmatprep.subr.mxu1 %v1120_v0  ;;  %v68_v3 = vld [vmem:[#allocation5 + $0x68] sm:$0xff]  ;;  %v1155_v4 = vand.u32 4294901760, %v70_v1  ;;  %v1157_v5 = vand.u32 4294901760, %v69_v2  ;;  %v67_v7 = vld [vmem:[#allocation5 + $0x60] sm:$0xff]  ;;  %v66_v8 = vld [vmem:[#allocation5 + $0x58] sm:$0xff]  ;;  %s1122_s24 = smov [#allocation7]  }
  0x1c   :  { %865 = vmatprep.mubr.msk.f32.mxu0 %vm1121_vm0, %v1120_v0  ;;  %900 = vmatprep.mubr.msk.f32.mxu1 %vm1121_vm0, %v1120_v0  ;;  %v1159_v6 = vand.u32 4294901760, %v68_v3  ;;  %v65_v9 = vld [vmem:[#allocation5 + $0x50] sm:$0xff]  ;;  %v1161_v10 = vand.u32 4294901760, %v67_v7  ;;  %v1163_v11 = vand.u32 4294901760, %v66_v8  ;;  %v64_v13 = vld [vmem:[#allocation5 + $0x48] sm:$0xff]  ;;  %v63_v14 = vld [vmem:[#allocation5 + $0x40] sm:$0xff] }
  0x1d   :  { %v1165_v12 = vand.u32 4294901760, %v65_v9  ;;  %834 = vmatpush3.msra.mxu0 %v1155_v4  ;;  %v1169_v15 = vsub.f32 %v70_v1, %v1155_v4  ;;  %v1172_v16 = vsub.f32 %v69_v2, %v1157_v5  ;;  %v1174_v17 = vand.u32 4294901760, %v64_v13  ;;  %v62_v19 = vld [vmem:[#allocation5 + $0x38] sm:$0xff]  ;;  %v61_v26 = vld [vmem:[#allocation5 + $0x30] sm:$0xff]  ;;  %v60_v36 = vld [vmem:[#allocation5 + $0x28] sm:$0xff]  ;;  %s720_s25 = sshll.u32 %s1122_s24, 4  ;;  %s721_s25 = int_to_ptr.vmem [resolvable:$true] %s720_s25 }
  0x1e   :  { %v1177_v18 = vsub.f32 %v68_v3, %v1159_v6  ;;  %835 = vmatprep.subr.mxu0 %v1120_v0  ;;  %v1181_v20 = vsub.f32 %v67_v7, %v1161_v10  ;;  %v1184_v21 = vsub.f32 %v66_v8, %v1163_v11  ;;  %v1190_v25 = vand.u32 4294901760, %v63_v14  ;;  %v59_v41 = vld [vmem:[#allocation5 + $0x20] sm:$0xff]  ;;  %v58_v49 = vld [vmem:[#allocation5 + $0x18] sm:$0xff]  ;;  %v57_v54 = vld [vmem:[#allocation5 + $0x10] sm:$0xff]  ;;  %s1090_s26 = scalar_lea.vmem %s721_s25, 128  ;;  %p1095_p11 = scmp.lt.s32.totalorder %s721_s25, %s721_s25 }
  0x1f   :  { %836 = vmatpush3.msra.mxu0 %v1157_v5  ;;  %v165_v22 = vand.u32 4294901760, %v1169_v15  ;;  %v172_v23 = vand.u32 4294901760, %v1172_v16  ;;  %v1194_v28 = vand.u32 4294901760, %v62_v19  ;;  %v1198_v30 = vsub.f32 %v65_v9, %v1165_v12  ;;  %v54_v50 = vld [vmem:[#allocation2] sm:$0xff]  ;;  %v56_v60 = vld [vmem:[#allocation5 + $0x8] sm:$0xff]  ;;  %v55_v7 = vld [vmem:[#allocation5] sm:$0xff]  ;;  %p1091_p10 = scmp.ne.s32.totalorder %s721_s25, %s1090_s26  ;;  %p1096_p12 = scmp.lt.s32.totalorder %s1090_s26, %s1090_s26 }
  0x20   :  { %v179_v24 = vand.u32 4294901760, %v1177_v18  ;;  %837 = vmatprep.subr.mxu0 %v1120_v0  ;;  %v186_v27 = vand.u32 4294901760, %v1181_v20  ;;  %v193_v29 = vand.u32 4294901760, %v1184_v21  ;;  %v1211_v34 = vsub.f32 %v64_v13, %v1174_v17 }
  0x21   :  { %838 = vmatpush3.msra.mxu0 %v1159_v6  ;;  %v166_v31 = vsub.f32 %v1169_v15, %v165_v22  ;;  %v173_v32 = vsub.f32 %v1172_v16, %v172_v23  ;;  %v1214_v35 = vand.u32 4294901760, %v61_v26  ;;  %v200_v40 = vand.u32 4294901760, %v1198_v30  ;;  %p1097_p13 = por %p1096_p12, %p1095_p11 }
  0x22   :  { %v180_v33 = vsub.f32 %v1177_v18, %v179_v24  ;;  %839 = vmatprep.subr.mxu0 %v1120_v0  ;;  %v187_v39 = vsub.f32 %v1181_v20, %v186_v27  ;;  %v194_v42 = vsub.f32 %v1184_v21, %v193_v29  ;;  %v1226_v43 = vsub.f32 %v63_v14, %v1190_v25 }
  0x23   :  { %840 = vmatpush3.msra.mxu0 %v1161_v10  ;;  %v167_v37 = vand.u32 4294901760, %v166_v31  ;;  %v174_v38 = vand.u32 4294901760, %v173_v32  ;;  %v1229_v45 = vand.u32 4294901760, %v60_v36  ;;  %v207_v46 = vand.u32 4294901760, %v1211_v34  ;;  %p1098_p0 = pnand %p1097_p13, %p1091_p10 }
  0x24   :  { %841 = vmatprep.subr.mxu0 %v1120_v0  ;;  %v181_v44 = vand.u32 4294901760, %v180_v33  ;;  %v1233_v47 = vsub.f32 %v62_v19, %v1194_v28  ;;  %v1237_v48 = vand.u32 4294901760, %v59_v41  ;;  %v188_v51 = vand.u32 4294901760, %v187_v39 }
  0x25   :  { %842 = vmatpush3.msra.mxu0 %v1163_v11  ;;  %869 = vmatpush3.msra.mxu1 %v167_v37  ;;  %v201_v52 = vsub.f32 %v1198_v30, %v200_v40  ;;  %v214_v53 = vand.u32 4294901760, %v1226_v43  ;;  %v1245_v55 = vsub.f32 %v61_v26, %v1214_v35  ;;  %v195_v56 = vand.u32 4294901760, %v194_v42 }
  0x26   :  { %843 = vmatprep.subr.mxu0 %v1120_v0  ;;  %870 = vmatprep.subr.mxu1 %v1120_v0  ;;  %v221_v57 = vand.u32 4294901760, %v1233_v47  ;;  %v208_v58 = vsub.f32 %v1211_v34, %v207_v46  ;;  %v1254_v59 = vand.u32 4294901760, %v58_v49  ;;  %v1257_v61 = vsub.f32 %v60_v36, %v1229_v45 }
  0x27   :  { %844 = vmatpush3.msra.mxu0 %v1165_v12  ;;  %871 = vmatpush3.msra.mxu1 %v174_v38  ;;  %v1259_v62 = vand.u32 4294901760, %v54_v50  ;;  %v1263_v63 = vand.u32 4294901760, %v57_v54  ;;  %v202_v1 = vand.u32 4294901760, %v201_v52  ;;  %v215_v2 = vsub.f32 %v1226_v43, %v214_v53 }
  0x28   :  { %845 = vmatprep.subr.mxu0 %v1120_v0  ;;  %872 = vmatprep.subr.mxu1 %v1120_v0  ;;  %v228_v3 = vand.u32 4294901760, %v1245_v55  ;;  %v1271_v8 = vsub.f32 %v59_v41, %v1237_v48  ;;  %v222_v9 = vsub.f32 %v1233_v47, %v221_v57  ;;  %v1278_v13 = vand.u32 4294901760, %v56_v60 }
  0x29   :  { %846 = vmatpush3.msra.mxu0 %v1174_v17  ;;  %873 = vmatpush3.msra.mxu1 %v181_v44  ;;  %v209_v14 = vand.u32 4294901760, %v208_v58  ;;  %v235_v19 = vand.u32 4294901760, %v1257_v61  ;;  %v1283_v26 = vsub.f32 %v54_v50, %v1259_v62  ;;  %v1286_v31 = vsub.f32 %v58_v49, %v1254_v59 }
  0x2a   :  { %847 = vmatprep.subr.mxu0 %v1120_v0  ;;  %874 = vmatprep.subr.mxu1 %v1120_v0  ;;  %v1290_v32 = vand.u32 4294901760, %v55_v7  ;;  %v216_v33 = vand.u32 4294901760, %v215_v2  ;;  %v229_v36 = vsub.f32 %v1245_v55, %v228_v3  ;;  %v242_v37 = vand.u32 4294901760, %v1271_v8 }
  0x2b   :  { %848 = vmatpush3.msra.mxu0 %v1190_v25  ;;  %875 = vmatpush3.msra.mxu1 %v188_v51  ;;  %v1298_v38 = vsub.f32 %v57_v54, %v1263_v63  ;;  %v223_v39 = vand.u32 4294901760, %v222_v9  ;;  %v236_v41 = vsub.f32 %v1257_v61, %v235_v19  ;;  %v154_v42 = vand.u32 4294901760, %v1283_v26 }
  0x2c   :  { %849 = vmatprep.subr.mxu0 %v1120_v0  ;;  %876 = vmatprep.subr.mxu1 %v1120_v0  ;;  %v249_v44 = vand.u32 4294901760, %v1286_v31  ;;  %v1309_v49 = vsub.f32 %v56_v60, %v1278_v13  ;;  %v230_v50 = vand.u32 4294901760, %v229_v36  ;;  %v243_v51 = vsub.f32 %v1271_v8, %v242_v37 }
  0x2d   :  { %850 = vmatpush3.msra.mxu0 %v1194_v28  ;;  %877 = vmatpush3.msra.mxu1 %v195_v56  ;;  %v256_v52 = vand.u32 4294901760, %v1298_v38  ;;  %v1319_v54 = vsub.f32 %v55_v7, %v1290_v32  ;;  %v237_v56 = vand.u32 4294901760, %v236_v41  ;;  %v155_v58 = vsub.f32 %v1283_v26, %v154_v42 }
  0x2e   :  { %851 = vmatprep.subr.mxu0 %v1120_v0  ;;  %878 = vmatprep.subr.mxu1 %v1120_v0  ;;  %v250_v60 = vsub.f32 %v1286_v31, %v249_v44  ;;  %v244_v2 = vand.u32 4294901760, %v243_v51 }
  0x2f   :  { %852 = vmatpush3.msra.mxu0 %v1214_v35  ;;  %879 = vmatpush3.msra.mxu1 %v202_v1  ;;  %v263_v1 = vand.u32 4294901760, %v1309_v49  ;;  %v257_v7 = vsub.f32 %v1298_v38, %v256_v52  ;;  %v270_v9 = vand.u32 4294901760, %v1319_v54 }
  0x30   :  { %853 = vmatprep.subr.mxu0 %v1120_v0  ;;  %880 = vmatprep.subr.mxu1 %v1120_v0 }
  0x31   :  { %854 = vmatpush3.msra.mxu0 %v1229_v45  ;;  %881 = vmatpush3.msra.mxu1 %v209_v14  ;;  %v156_v14 = vand.u32 4294901760, %v155_v58  ;;  %v264_v36 = vsub.f32 %v1309_v49, %v263_v1  ;;  %v271_v41 = vsub.f32 %v1319_v54, %v270_v9 }
  0x32   :  { %855 = vmatprep.subr.mxu0 %v1120_v0  ;;  %882 = vmatprep.subr.mxu1 %v1120_v0 }
  0x33   :  { %856 = vmatpush3.msra.mxu0 %v1237_v48  ;;  %883 = vmatpush3.msra.mxu1 %v216_v33  ;;  %v251_v33 = vand.u32 4294901760, %v250_v60  ;;  %v272_v51 = vand.u32 4294901760, %v271_v41 }
  0x34   :  { %857 = vmatprep.subr.mxu0 %v1120_v0  ;;  %884 = vmatprep.subr.mxu1 %v1120_v0 }
  0x35   :  { %858 = vmatpush3.msra.mxu0 %v1254_v59  ;;  %885 = vmatpush3.msra.mxu1 %v223_v39  ;;  %v258_v39 = vand.u32 4294901760, %v257_v7 }
  0x36   :  { %859 = vmatprep.subr.mxu0 %v1120_v0  ;;  %886 = vmatprep.subr.mxu1 %v1120_v0 }
  0x37   :  { %860 = vmatpush3.msra.mxu0 %v1263_v63  ;;  %887 = vmatpush3.msra.mxu1 %v230_v50  ;;  %v265_v50 = vand.u32 4294901760, %v264_v36 }
  0x38   :  { %861 = vmatprep.subr.mxu0 %v1120_v0  ;;  %888 = vmatprep.subr.mxu1 %v1120_v0 }
  0x39   :  { %862 = vmatpush3.msra.mxu0 %v1278_v13  ;;  %889 = vmatpush3.msra.mxu1 %v237_v56 }
  0x3a   :  { %863 = vmatprep.subr.mxu0 %v1120_v0  ;;  %890 = vmatprep.subr.mxu1 %v1120_v0 }
  0x3b   :  { %864 = vmatpush3.msra.mxu0 %v1290_v32  ;;  %891 = vmatpush3.msra.mxu1 %v244_v2 }
  0x3c   :  { %892 = vmatprep.subr.mxu1 %v1120_v0  ;;  %903 = vmatprep.subr.mxu0 %v1120_v0 }
  0x3d   :  { %866 = vmatmul.mubr.f32.vlgmr.msra.gmra.mxu0 %v156_v14  ;;  %893 = vmatpush3.msra.mxu1 %v251_v33 }
  0x3e   :  { %904 = vmatpush3.msra.mxu0 %v1169_v15  ;;  %894 = vmatprep.subr.mxu1 %v1120_v0 }
  0x3f   :  { %905 = vmatprep.subr.mxu0 %v1120_v0  ;;  %895 = vmatpush3.msra.mxu1 %v258_v39 }
  0x40   :  { %906 = vmatpush3.msra.mxu0 %v1172_v16  ;;  %896 = vmatprep.subr.mxu1 %v1120_v0 }
  0x41   :  { %907 = vmatprep.subr.mxu0 %v1120_v0  ;;  %897 = vmatpush3.msra.mxu1 %v265_v50 }
  0x42   :  { %908 = vmatpush3.msra.mxu0 %v1177_v18  ;;  %898 = vmatprep.subr.mxu1 %v1120_v0 }
  0x43   :  { %909 = vmatprep.subr.mxu0 %v1120_v0  ;;  %899 = vmatpush3.msra.mxu1 %v272_v51 }
  0x44   :  { %910 = vmatpush3.msra.mxu0 %v1181_v20  ;;  %901 = vmatmul.mubr.f32.vlgmr.msra.gmra.mxu1 %v1259_v62 }
  0x45   :  { %911 = vmatprep.subr.mxu0 %v1120_v0  ;;  %938 = vmatprep.subr.mxu1 %v1120_v0 }
  0x46   :  { %912 = vmatpush3.msra.mxu0 %v1184_v21  ;;  %939 = vmatpush3.msra.mxu1 %v1155_v4 }
  0x47   :  { %913 = vmatprep.subr.mxu0 %v1120_v0  ;;  %940 = vmatprep.subr.mxu1 %v1120_v0 }
  0x48   :  { %914 = vmatpush3.msra.mxu0 %v1198_v30  ;;  %941 = vmatpush3.msra.mxu1 %v1157_v5 }
  0x49   :  { %915 = vmatprep.subr.mxu0 %v1120_v0  ;;  %942 = vmatprep.subr.mxu1 %v1120_v0 }
  0x4a   :  { %916 = vmatpush3.msra.mxu0 %v1211_v34  ;;  %943 = vmatpush3.msra.mxu1 %v1159_v6 }
  0x4b   :  { %917 = vmatprep.subr.mxu0 %v1120_v0  ;;  %944 = vmatprep.subr.mxu1 %v1120_v0 }
  0x4c   :  { %918 = vmatpush3.msra.mxu0 %v1226_v43  ;;  %945 = vmatpush3.msra.mxu1 %v1161_v10 }
  0x4d   :  { %919 = vmatprep.subr.mxu0 %v1120_v0  ;;  %946 = vmatprep.subr.mxu1 %v1120_v0 }
  0x4e   :  { %920 = vmatpush3.msra.mxu0 %v1233_v47  ;;  %947 = vmatpush3.msra.mxu1 %v1163_v11 }
  0x4f   :  { %921 = vmatprep.subr.mxu0 %v1120_v0  ;;  %948 = vmatprep.subr.mxu1 %v1120_v0 }
  0x50   :  { %922 = vmatpush3.msra.mxu0 %v1245_v55  ;;  %949 = vmatpush3.msra.mxu1 %v1165_v12 }
  0x51   :  { %923 = vmatprep.subr.mxu0 %v1120_v0  ;;  %950 = vmatprep.subr.mxu1 %v1120_v0 }
  0x52   :  { %924 = vmatpush3.msra.mxu0 %v1257_v61  ;;  %951 = vmatpush3.msra.mxu1 %v1174_v17 }
  0x53   :  { %925 = vmatprep.subr.mxu0 %v1120_v0  ;;  %952 = vmatprep.subr.mxu1 %v1120_v0 }
  0x54   :  { %926 = vmatpush3.msra.mxu0 %v1271_v8  ;;  %953 = vmatpush3.msra.mxu1 %v1190_v25 }
  0x55   :  { %927 = vmatprep.subr.mxu0 %v1120_v0  ;;  %954 = vmatprep.subr.mxu1 %v1120_v0 }
  0x56   :  { %928 = vmatpush3.msra.mxu0 %v1286_v31  ;;  %955 = vmatpush3.msra.mxu1 %v1194_v28 }
  0x57   :  { %929 = vmatprep.subr.mxu0 %v1120_v0  ;;  %956 = vmatprep.subr.mxu1 %v1120_v0 }
  0x58   :  { %930 = vmatpush3.msra.mxu0 %v1298_v38  ;;  %957 = vmatpush3.msra.mxu1 %v1214_v35 }
  0x59   :  { %931 = vmatprep.subr.mxu0 %v1120_v0  ;;  %958 = vmatprep.subr.mxu1 %v1120_v0 }
  0x5a   :  { %932 = vmatpush3.msra.mxu0 %v1309_v49  ;;  %959 = vmatpush3.msra.mxu1 %v1229_v45 }
  0x5b   :  { %933 = vmatprep.subr.mxu0 %v1120_v0  ;;  %960 = vmatprep.subr.mxu1 %v1120_v0 }
  0x5c   :  { %934 = vmatpush3.msra.mxu0 %v1319_v54  ;;  %935 = vmatprep.mubr.msk.f32.mxu0 %vm1121_vm0, %v1120_v0 }
  0x5d   :  { %961 = vmatpush3.msra.mxu1 %v1237_v48  ;;  %936 = vmatmul.mubr.f32.vlgmr.msra.gmra.mxu0 %v1283_v26 }
  0x5e   :  { %962 = vmatprep.subr.mxu1 %v1120_v0  ;;  %973 = vmatprep.subr.mxu0 %v1120_v0 }
  0x5f   :  { %963 = vmatpush3.msra.mxu1 %v1254_v59  ;;  %974 = vmatpush3.msra.mxu0 %v165_v22 }
  0x60   :  { %964 = vmatprep.subr.mxu1 %v1120_v0  ;;  %975 = vmatprep.subr.mxu0 %v1120_v0 }
  0x61   :  { %965 = vmatpush3.msra.mxu1 %v1263_v63  ;;  %976 = vmatpush3.msra.mxu0 %v172_v23 }
  0x62   :  { %966 = vmatprep.subr.mxu1 %v1120_v0  ;;  %977 = vmatprep.subr.mxu0 %v1120_v0 }
  0x63   :  { %967 = vmatpush3.msra.mxu1 %v1278_v13  ;;  %978 = vmatpush3.msra.mxu0 %v179_v24 }
  0x64   :  { %968 = vmatprep.subr.mxu1 %v1120_v0  ;;  %979 = vmatprep.subr.mxu0 %v1120_v0 }
  0x65   :  { %969 = vmatpush3.msra.mxu1 %v1290_v32  ;;  %970 = vmatprep.mubr.msk.f32.mxu1 %vm1121_vm0, %v1120_v0 }
  0x66   :  { %980 = vmatpush3.msra.mxu0 %v186_v27  ;;  %971 = vmatmul.mubr.f32.vlgmr.msra.gmra.mxu1 %v154_v42 }
  0x67   :  { %981 = vmatprep.subr.mxu0 %v1120_v0  ;;  %1008 = vmatprep.subr.mxu1 %v1120_v0 }
  0x68   :  { %982 = vmatpush3.msra.mxu0 %v193_v29  ;;  %1009 = vmatpush3.msra.mxu1 %v1155_v4 }
  0x69   :  { %983 = vmatprep.subr.mxu0 %v1120_v0  ;;  %1010 = vmatprep.subr.mxu1 %v1120_v0 }
  0x6a   :  { %984 = vmatpush3.msra.mxu0 %v200_v40  ;;  %1011 = vmatpush3.msra.mxu1 %v1157_v5 }
  0x6b   :  { %985 = vmatprep.subr.mxu0 %v1120_v0  ;;  %1012 = vmatprep.subr.mxu1 %v1120_v0 }
  0x6c   :  { %986 = vmatpush3.msra.mxu0 %v207_v46  ;;  %1013 = vmatpush3.msra.mxu1 %v1159_v6 }
  0x6d   :  { %987 = vmatprep.subr.mxu0 %v1120_v0  ;;  %1014 = vmatprep.subr.mxu1 %v1120_v0 }
  0x6e   :  { %988 = vmatpush3.msra.mxu0 %v214_v53  ;;  %1015 = vmatpush3.msra.mxu1 %v1161_v10 }
  0x6f   :  { %989 = vmatprep.subr.mxu0 %v1120_v0  ;;  %1016 = vmatprep.subr.mxu1 %v1120_v0 }
  0x70   :  { %990 = vmatpush3.msra.mxu0 %v221_v57  ;;  %1017 = vmatpush3.msra.mxu1 %v1163_v11 }
  0x71   :  { %991 = vmatprep.subr.mxu0 %v1120_v0  ;;  %1018 = vmatprep.subr.mxu1 %v1120_v0 }
  0x72   :  { %992 = vmatpush3.msra.mxu0 %v228_v3  ;;  %1019 = vmatpush3.msra.mxu1 %v1165_v12 }
  0x73   :  { %993 = vmatprep.subr.mxu0 %v1120_v0  ;;  %1020 = vmatprep.subr.mxu1 %v1120_v0 }
  0x74   :  { %994 = vmatpush3.msra.mxu0 %v235_v19  ;;  %1021 = vmatpush3.msra.mxu1 %v1174_v17 }
  0x75   :  { %995 = vmatprep.subr.mxu0 %v1120_v0  ;;  %1022 = vmatprep.subr.mxu1 %v1120_v0 }
  0x76   :  { %996 = vmatpush3.msra.mxu0 %v242_v37  ;;  %1023 = vmatpush3.msra.mxu1 %v1190_v25 }
  0x77   :  { %997 = vmatprep.subr.mxu0 %v1120_v0  ;;  %1024 = vmatprep.subr.mxu1 %v1120_v0 }
  0x78   :  { %998 = vmatpush3.msra.mxu0 %v249_v44  ;;  %1025 = vmatpush3.msra.mxu1 %v1194_v28 }
  0x79   :  { %999 = vmatprep.subr.mxu0 %v1120_v0  ;;  %1026 = vmatprep.subr.mxu1 %v1120_v0 }
  0x7a   :  { %1000 = vmatpush3.msra.mxu0 %v256_v52  ;;  %1027 = vmatpush3.msra.mxu1 %v1214_v35 }
  0x7b   :  { %1001 = vmatprep.subr.mxu0 %v1120_v0  ;;  %1028 = vmatprep.subr.mxu1 %v1120_v0 }
  0x7c   :  { %1002 = vmatpush3.msra.mxu0 %v263_v1  ;;  %1029 = vmatpush3.msra.mxu1 %v1229_v45 }
  0x7d   :  { %1003 = vmatprep.subr.mxu0 %v1120_v0  ;;  %1030 = vmatprep.subr.mxu1 %v1120_v0 }
  0x7e   :  { %1004 = vmatpush3.msra.mxu0 %v270_v9  ;;  %1005 = vmatprep.mubr.msk.f32.mxu0 %vm1121_vm0, %v1120_v0 }
  0x7f   :  { %1031 = vmatpush3.msra.mxu1 %v1237_v48  ;;  %1006 = vmatmul.mubr.f32.vlgmr.msra.gmra.mxu0 %v1259_v62 }
  0x80   :  { %1032 = vmatprep.subr.mxu1 %v1120_v0  ;;  %1040 = vmatprep.mubr.msk.f32.mxu1 %vm1121_vm0, %v1120_v0 }
  0x81   :  { %1033 = vmatpush3.msra.mxu1 %v1254_v59 }
  0x82   :  { %1034 = vmatprep.subr.mxu1 %v1120_v0 }
  0x83   :  { %1035 = vmatpush3.msra.mxu1 %v1263_v63 }
  0x84   :  { %1036 = vmatprep.subr.mxu1 %v1120_v0 }
  0x85   :  { %1037 = vmatpush3.msra.mxu1 %v1278_v13 }
  0x86   :  { %1038 = vmatprep.subr.mxu1 %v1120_v0  ;;  %v730_v0 = vld [vmem:[%s1520_s2] ss:$0 sm:$0xff] }
  0x87   :  { %1039 = vmatpush3.msra.mxu1 %v1290_v32 }
  0x88   :  { %1041 = vmatmul.mubr.f32.vlgmr.msra.gmra.mxu1 %v1259_v62 }
  0xfd   :  { %v158_v4 = vpop.f32.mrf.mxu0 }
  0xff   :  { %v867_v5 = vpop.f32.mrf.mxu0 }
 0x104   :  { %v309_v6 = vpop.f32.mrf.mxu1 }
 0x105   :  { %v310_v18 = vadd.f32 %v309_v6, %v158_v4 }
 0x106   :  { %v902_v10 = vpop.f32.mrf.mxu1 }
 0x11d   :  { %v413_v11 = vpop.f32.mrf.mxu0 }
 0x11e   :  { %v414_v21 = vadd.f32 %v413_v11, %v310_v18 }
 0x11f   :  { %v937_v12 = vpop.f32.mrf.mxu0 }
 0x126   :  { %v502_v15 = vpop.f32.mrf.mxu1 }
 0x127   :  { %v503_v22 = vadd.f32 %v502_v15, %v414_v21 }
 0x128   :  { %v972_v16 = vpop.f32.mrf.mxu1 }
 0x13f   :  { %v621_v17 = vpop.f32.mrf.mxu0 }
 0x140   :  { %v622_v23 = vadd.f32 %v621_v17, %v503_v22 }
 0x141   :  { %v1007_v20 = vpop.f32.mrf.mxu0 }
 0x148   :  { %v708_v24 = vpop.f32.mrf.mxu1 }
 0x149   :  { %v709_v25 = vadd.f32 %v708_v24, %v622_v23 }
 0x14a   :  { %v1042_v27 = vpop.f32.mrf.mxu1 }
 0x14b   :  { %v712_v28 = vadd.f32 %v730_v0, %v709_v25 }
 0x14d   :  { %713 = vst [vmem:[#allocation7] sm:$0xff] %v712_v28 }
 0x14e   :  { %1101 = shalt.err (!%p1098_p0)
}
 0x14f   :  { %723 = dma.vmem_to_hbm [thread:$0]  %s721_s25, 128, %s1521_s3, [#allocation4]  }
 0x150   :  { %1114 = dma.done.wait [#allocation4], 128  }
 0x151   :  { %1115 = vsyncadd [#allocation4], 4294967168 }
 0x152   :  { %727 = vsyncpa [#allocation3], 1 }
 0x153   :  { %728 = vsyncpa [#allocation6], 1 }
 0x154   :  { %729 = vsyncpa [#allocation4], 1 }

</bundles_post_ra>
